<compile_context>
chip_gen: v7x
topology: tpu7x:2x2x1
jax: 0.10.0
libtpu: 0.0.40
codegen_flags: <defaults>
</compile_context>

<pallas_src>
import functools
import math

import jax
import jax.numpy as jnp
from jax.experimental import pallas as pl
from jax.experimental.pallas import tpu as pltpu

LANE = 128


# ----------------------------------------------------------------------------
# Pallas kernel: whole forward pass.  Matmuls on MXU, relu/sigmoid on VPU/EUP,
# node-axis sum/max reductions on XLU.  Everything resident in VMEM.
# ----------------------------------------------------------------------------
def _textgcn_kernel(x_ref, adjm_ref, mask_ref, wgcnt_ref,
                    wgate_ref, bgate_ref, wpred_ref, bpred_ref,
                    out_ref, *, n_nodes):
    x_in = x_ref[...]        # (P, P)  node features, zero-padded, lane-dense
    adj_m = adjm_ref[...]    # (P, P)  adjacency with node mask folded into rows
    mask = mask_ref[...]     # (P, P)  node mask pre-broadcast across lanes
    b_gate = bgate_ref[...]  # (1, 2P) fused [b_ln | lane-replicated b_att]
    b_pred = bpred_ref[...]  # (1, CP)

    P = x_in.shape[1]        # static

    def gcn_layer(x, w_t):
        # torch: support = (x.T @ W).T == W.T @ x  (valid only because S == F).
        # w_t is W pre-transposed in the wrapper, so this is a plain MXU dot.
        # The node mask is pre-folded into adj_m rows, so no post-multiply.
        support = jnp.dot(w_t, x, preferred_element_type=jnp.float32)      # (P, P)
        out = jnp.dot(adj_m, support, preferred_element_type=jnp.float32)  # (P, P)
        return jnp.maximum(out, 0.0)

    num_layers = wgcnt_ref.shape[0]  # static
    x = gcn_layer(x_in, wgcnt_ref[0])
    for layer in range(1, num_layers):
        x = x + gcn_layer(x, wgcnt_ref[layer])

    # Fused gate matmul: one MXU pass for [Linear(H->H) | lane-replicated H->1
    # attention head].  The split is a static slice at the 128-lane boundary.
    y = jnp.dot(x, wgate_ref[...], preferred_element_type=jnp.float32) + b_gate  # (P, 2P)
    h = jnp.maximum(y[:, :P], 0.0)                 # act(ln(x))
    att = jax.nn.sigmoid(y[:, P:])                 # per-node gate, lane-replicated
    xg = att * h * mask                            # (P, P)

    # Graph embedding: sum over nodes * max over nodes (batch == 1).  Padded
    # node rows are excluded from the max so the result is exact.
    row_ids = jax.lax.broadcasted_iota(jnp.int32, xg.shape, 0)
    xg_for_max = jnp.where(row_ids < n_nodes, xg, -jnp.inf)
    ge = (jnp.sum(xg, axis=0, keepdims=True)
          * jnp.max(xg_for_max, axis=0, keepdims=True))                    # (1, P)

    # Prediction head: Linear(H -> C), lane-dense padded output.
    out_ref[...] = (jnp.dot(ge, wpred_ref[...], preferred_element_type=jnp.float32)
                    + b_pred)                                              # (1, CP)


# ----------------------------------------------------------------------------
# Wrapper: trace-time padding / pre-transposition / lane replication / weight
# fusion, then one grid-less pallas_call with whole-array VMEM blocks.
# ----------------------------------------------------------------------------
def _pad_to(a, shape):
    pads = [(0, t - s) for s, t in zip(a.shape, shape)]
    return jnp.pad(a, pads)


@jax.jit
def textgcn_forward(x, adj, mask, w_gcn, w_att, b_att, w_ln, b_ln, w_pred, b_pred):
    """x: (S, F), adj: (S, S), mask: (S, 1), w_gcn: (L, F, H), ... -> (1, C)."""
    S, F = x.shape
    L, _, H = w_gcn.shape
    C = w_pred.shape[1]
    # The module's permute-based GCN matmul is only shape-valid when S == F == H.
    assert S == F == H, "TextGCN GraphConvolution arithmetic requires S == F == H"

    P = max(LANE, -(-max(S, F, H) // LANE) * LANE)   # lane-dense padded node/feat dim
    CP = max(LANE, -(-C // LANE) * LANE)             # lane-dense padded class dim

    # Zero-padding keeps all padded rows/columns exactly zero through the
    # whole network (relu/mask preserve zeros), so results are unchanged.
    x_p = _pad_to(x, (P, P))
    # Fold the per-layer node mask into adj rows: relu((m*A)@s) == relu(A@s)*m
    # for m >= 0, so the kernel skips L full-tile VPU multiplies.
    adj_m = _pad_to(mask * adj, (P, P))
    mask_p = _pad_to(jnp.broadcast_to(mask, (S, P)), (P, P))        # lane-replicated mask
    w_gcn_t = jnp.swapaxes(_pad_to(w_gcn, (L, P, P)), 1, 2)         # pre-transposed weights
    # Fused gate weight: [w_ln | lane-replicated w_att] -> one (P, 2P) matmul.
    w_ln_p = _pad_to(w_ln, (P, P))
    w_att_rep = _pad_to(jnp.broadcast_to(w_att, (H, P)), (P, P))    # lane-replicated H->1 head
    w_gate = jnp.concatenate([w_ln_p, w_att_rep], axis=1)           # (P, 2P)
    b_gate = jnp.concatenate([_pad_to(b_ln, (1, P)),
                              jnp.broadcast_to(b_att.reshape(1, 1), (1, P))],
                             axis=1)                                # (1, 2P)
    w_pred_p = _pad_to(w_pred, (P, CP))
    b_pred_p = _pad_to(b_pred, (1, CP))

    vmem_spec = pl.BlockSpec(memory_space=pltpu.MemorySpace.VMEM)   # whole array, resident

    out_p = pl.pallas_call(
        functools.partial(_textgcn_kernel, n_nodes=S),
        out_shape=jax.ShapeDtypeStruct((1, CP), jnp.float32),
        in_specs=[vmem_spec] * 8,
        out_specs=vmem_spec,
    )(x_p, adj_m, mask_p, w_gcn_t, w_gate, b_gate, w_pred_p, b_pred_p)

    return out_p[:, :C]


# ----------------------------------------------------------------------------
# Pure-JAX reference (same arithmetic as the PyTorch module), for sanity check.
# ----------------------------------------------------------------------------
def reference(x, adj, mask, w_gcn, w_att, b_att, w_ln, b_ln, w_pred, b_pred):
    def gcn_layer(xx, w):
        return jax.nn.relu(adj @ (xx.T @ w).T)

    h = gcn_layer(x, w_gcn[0]) * mask
    for layer in range(1, w_gcn.shape[0]):
        h = h + gcn_layer(h, w_gcn[layer]) * mask
    att = jax.nn.sigmoid(h @ w_att + b_att)
    z = jax.nn.relu(h @ w_ln + b_ln)
    z = att * z * mask
    ge = jnp.sum(z, axis=0, keepdims=True) * jnp.max(z, axis=0, keepdims=True)
    return ge @ w_pred + b_pred


if __name__ == "__main__":
    # Shapes (forced by the module's permute-based matmuls): n=1, S == F == H.
    S = F = H = 32            # nodes == feature_dim_size == hidden_size
    C = 4                     # num_classes
    L = 2                     # num_GNN_layers

    key = jax.random.PRNGKey(0)
    keys = jax.random.split(key, 10)

    # --- inputs ---
    inputs = jax.random.normal(keys[0], (1, S, F), dtype=jnp.float32)
    adj = jax.random.uniform(keys[1], (S, S), dtype=jnp.float32)
    adj = adj / jnp.sum(adj, axis=-1, keepdims=True)                     # row-normalized
    mask3 = (jax.random.uniform(keys[2], (1, S, 1)) > 0.2).astype(jnp.float32)

    # --- parameters (deterministic in-script init, mirroring module shapes) ---
    stdv = math.sqrt(6.0 / (F + H))
    w_gcn = jax.random.uniform(keys[3], (L, F, H), minval=-stdv, maxval=stdv,
                               dtype=jnp.float32)                        # GCN weights (no bias)
    lin = 1.0 / math.sqrt(H)
    w_att = jax.random.uniform(keys[4], (H, 1), minval=-lin, maxval=lin, dtype=jnp.float32)
    b_att = jax.random.uniform(keys[5], (1, 1), minval=-lin, maxval=lin, dtype=jnp.float32)
    w_ln = jax.random.uniform(keys[6], (H, H), minval=-lin, maxval=lin, dtype=jnp.float32)
    b_ln = jax.random.uniform(keys[7], (1, H), minval=-lin, maxval=lin, dtype=jnp.float32)
    w_pred = jax.random.uniform(keys[8], (H, C), minval=-lin, maxval=lin, dtype=jnp.float32)
    b_pred = jax.random.uniform(keys[9], (1, C), minval=-lin, maxval=lin, dtype=jnp.float32)

    # --- flatten to kernel layout (batch n = 1) ---
    x2d = inputs.reshape(S, F)
    mask2d = mask3.reshape(S, 1)

    out = textgcn_forward(x2d, adj, mask2d, w_gcn, w_att, b_att,
                          w_ln, b_ln, w_pred, b_pred)
    out = jax.block_until_ready(out)

    with jax.default_matmul_precision("highest"):
        ref = reference(x2d, adj, mask2d, w_gcn, w_att, b_att,
                        w_ln, b_ln, w_pred, b_pred)
        ref = jax.block_until_ready(ref)

    assert out.shape == (1, C)
    assert jnp.allclose(out, ref, rtol=2e-2, atol=2e-2), (out, ref)

    print("KERNEL_OK")
</pallas_src>

<mosaic_0001>
module attributes {stable_mosaic.version = 11 : i64} {
  func.func @_textgcn_kernel(%arg0: memref<128x128xf32, #tpu.memory_space<vmem>>, %arg1: memref<128x128xf32, #tpu.memory_space<vmem>>, %arg2: memref<128x128xf32, #tpu.memory_space<vmem>>, %arg3: memref<2x128x128xf32, #tpu.memory_space<vmem>>, %arg4: memref<128x256xf32, #tpu.memory_space<vmem>>, %arg5: memref<1x256xf32, #tpu.memory_space<vmem>>, %arg6: memref<128x128xf32, #tpu.memory_space<vmem>>, %arg7: memref<1x128xf32, #tpu.memory_space<vmem>>, %arg8: memref<1x128xf32, #tpu.memory_space<vmem>>) attributes {dimension_semantics = [], scalar_prefetch = 0 : i64, scratch_operands = 0 : i64, tpu.core_type = #tpu.core_type<tc>} {
    %c0 = arith.constant 0 : index
    %c0_0 = arith.constant 0 : index
    %0 = vector.load %arg0[%c0, %c0_0] : memref<128x128xf32, #tpu.memory_space<vmem>>, vector<128x128xf32>
    %c0_1 = arith.constant 0 : index
    %c0_2 = arith.constant 0 : index
    %1 = vector.load %arg1[%c0_1, %c0_2] : memref<128x128xf32, #tpu.memory_space<vmem>>, vector<128x128xf32>
    %c0_3 = arith.constant 0 : index
    %c0_4 = arith.constant 0 : index
    %2 = vector.load %arg2[%c0_3, %c0_4] : memref<128x128xf32, #tpu.memory_space<vmem>>, vector<128x128xf32>
    %c0_5 = arith.constant 0 : index
    %c0_6 = arith.constant 0 : index
    %3 = vector.load %arg5[%c0_5, %c0_6] : memref<1x256xf32, #tpu.memory_space<vmem>>, vector<1x256xf32>
    %c0_7 = arith.constant 0 : index
    %c0_8 = arith.constant 0 : index
    %4 = vector.load %arg7[%c0_7, %c0_8] : memref<1x128xf32, #tpu.memory_space<vmem>>, vector<1x128xf32>
    %c0_9 = arith.constant 0 : index
    %c0_10 = arith.constant 0 : index
    %c0_11 = arith.constant 0 : index
    %5 = vector.load %arg3[%c0_9, %c0_10, %c0_11] : memref<2x128x128xf32, #tpu.memory_space<vmem>>, vector<1x128x128xf32>
    %6 = vector.shape_cast %5 : vector<1x128x128xf32> to vector<128x128xf32>
    %cst = arith.constant dense<0.000000e+00> : vector<128x128xf32>
    %7 = tpu.matmul %6, %0, %cst {dimension_numbers = #tpu.dot_dimension_numbers<[1], [0], [0], [1], [0, 0, 1, 1], [], []>} : vector<128x128xf32>, vector<128x128xf32>, vector<128x128xf32> -> vector<128x128xf32>
    %cst_12 = arith.constant dense<0.000000e+00> : vector<128x128xf32>
    %8 = tpu.matmul %1, %7, %cst_12 {dimension_numbers = #tpu.dot_dimension_numbers<[1], [0], [0], [1], [0, 0, 1, 1], [], []>} : vector<128x128xf32>, vector<128x128xf32>, vector<128x128xf32> -> vector<128x128xf32>
    %cst_13 = arith.constant 0.000000e+00 : f32
    %9 = vector.broadcast %cst_13 : f32 to vector<128x128xf32>
    %10 = arith.maximumf %8, %9 : vector<128x128xf32>
    %c1 = arith.constant 1 : index
    %c0_14 = arith.constant 0 : index
    %c0_15 = arith.constant 0 : index
    %11 = vector.load %arg3[%c1, %c0_14, %c0_15] : memref<2x128x128xf32, #tpu.memory_space<vmem>>, vector<1x128x128xf32>
    %12 = vector.shape_cast %11 : vector<1x128x128xf32> to vector<128x128xf32>
    %cst_16 = arith.constant dense<0.000000e+00> : vector<128x128xf32>
    %13 = tpu.matmul %12, %10, %cst_16 {dimension_numbers = #tpu.dot_dimension_numbers<[1], [0], [0], [1], [0, 0, 1, 1], [], []>} : vector<128x128xf32>, vector<128x128xf32>, vector<128x128xf32> -> vector<128x128xf32>
    %cst_17 = arith.constant dense<0.000000e+00> : vector<128x128xf32>
    %14 = tpu.matmul %1, %13, %cst_17 {dimension_numbers = #tpu.dot_dimension_numbers<[1], [0], [0], [1], [0, 0, 1, 1], [], []>} : vector<128x128xf32>, vector<128x128xf32>, vector<128x128xf32> -> vector<128x128xf32>
    %cst_18 = arith.constant 0.000000e+00 : f32
    %15 = vector.broadcast %cst_18 : f32 to vector<128x128xf32>
    %16 = arith.maximumf %14, %15 : vector<128x128xf32>
    %17 = arith.addf %10, %16 : vector<128x128xf32>
    %c0_19 = arith.constant 0 : index
    %c0_20 = arith.constant 0 : index
    %18 = vector.load %arg4[%c0_19, %c0_20] : memref<128x256xf32, #tpu.memory_space<vmem>>, vector<128x256xf32>
    %cst_21 = arith.constant dense<0.000000e+00> : vector<128x256xf32>
    %19 = tpu.matmul %17, %18, %cst_21 {dimension_numbers = #tpu.dot_dimension_numbers<[1], [0], [0], [1], [0, 0, 1, 1], [], []>} : vector<128x128xf32>, vector<128x256xf32>, vector<128x256xf32> -> vector<128x256xf32>
    %20 = vector.broadcast %3 : vector<1x256xf32> to vector<128x256xf32>
    %21 = arith.addf %19, %20 : vector<128x256xf32>
    %22 = vector.extract_strided_slice %21 {offsets = [0, 0], sizes = [128, 128], strides = [1, 1]} : vector<128x256xf32> to vector<128x128xf32>
    %cst_22 = arith.constant 0.000000e+00 : f32
    %23 = vector.broadcast %cst_22 : f32 to vector<128x128xf32>
    %24 = arith.maximumf %22, %23 : vector<128x128xf32>
    %25 = vector.extract_strided_slice %21 {offsets = [0, 128], sizes = [128, 128], strides = [1, 1]} : vector<128x256xf32> to vector<128x128xf32>
    %26 = arith.negf %25 : vector<128x128xf32>
    %27 = math.exp %26 : vector<128x128xf32>
    %cst_23 = arith.constant 1.000000e+00 : f32
    %28 = vector.broadcast %cst_23 : f32 to vector<128x128xf32>
    %29 = arith.addf %28, %27 : vector<128x128xf32>
    %30 = arith.divf %28, %29 : vector<128x128xf32>
    %31 = arith.mulf %30, %24 : vector<128x128xf32>
    %32 = arith.mulf %31, %2 : vector<128x128xf32>
    %33 = tpu.iota {dimensions = array<i32: 0>} : vector<128x128xi32>
    %c32_i32 = arith.constant 32 : i32
    %34 = vector.broadcast %c32_i32 : i32 to vector<128x128xi32>
    %35 = arith.cmpi slt, %33, %34 : vector<128x128xi32>
    %cst_24 = arith.constant 0xFF800000 : f32
    %36 = vector.broadcast %cst_24 : f32 to vector<128x128xf32>
    %37 = arith.select %35, %32, %36 : vector<128x128xi1>, vector<128x128xf32>
    %cst_25 = arith.constant dense<0.000000e+00> : vector<128xf32>
    %38 = vector.multi_reduction <add>, %32, %cst_25 [0] : vector<128x128xf32> to vector<128xf32>
    %39 = vector.shape_cast %38 : vector<128xf32> to vector<1x128xf32>
    %cst_26 = arith.constant dense<0xFF800000> : vector<128xf32>
    %40 = vector.multi_reduction <maximumf>, %37, %cst_26 [0] : vector<128x128xf32> to vector<128xf32>
    %41 = vector.shape_cast %40 : vector<128xf32> to vector<1x128xf32>
    %42 = arith.mulf %39, %41 : vector<1x128xf32>
    %c0_27 = arith.constant 0 : index
    %c0_28 = arith.constant 0 : index
    %43 = vector.load %arg6[%c0_27, %c0_28] : memref<128x128xf32, #tpu.memory_space<vmem>>, vector<128x128xf32>
    %cst_29 = arith.constant dense<0.000000e+00> : vector<1x128xf32>
    %44 = tpu.matmul %42, %43, %cst_29 {dimension_numbers = #tpu.dot_dimension_numbers<[1], [0], [0], [1], [0, 0, 1, 1], [], []>} : vector<1x128xf32>, vector<128x128xf32>, vector<1x128xf32> -> vector<1x128xf32>
    %45 = arith.addf %44, %4 : vector<1x128xf32>
    %c0_30 = arith.constant 0 : index
    %c0_31 = arith.constant 0 : index
    %46 = vector.load %arg8[%c0_30, %c0_31] : memref<1x128xf32, #tpu.memory_space<vmem>>, vector<1x128xf32>
    tpu.vector_store %arg8[%c0_30, %c0_31], %45 {strides = array<i32>} : memref<1x128xf32, #tpu.memory_space<vmem>>, vector<1x128xf32>,
    return
  }
}

</mosaic_0001>

<bundles_post_ra>
// kernel: textgcn_forward.1
= control target key start
LH: loop header
LB: loop body
LE: loop exit
PB: predicated region body
PF: predicated region fallthrough
CT: control target
= control target key end

     0   :  { %s2714_s0 = inlined_call_operand.vmem [shape: f32[128,128], index: 0, kind: input, shape index: {}]   ;;  %s2715_s1 = inlined_call_operand.vmem [shape: f32[128,128], index: 1, kind: input, shape index: {}]   ;;  %s2716_s2 = inlined_call_operand.vmem [shape: f32[128,128], index: 2, kind: input, shape index: {}]   ;;  %s2717_s3 = inlined_call_operand.vmem [shape: f32[2,128,128], index: 3, kind: input, shape index: {}]   ;;  %s2718_s4 = inlined_call_operand.vmem [shape: f32[128,256], index: 4, kind: input, shape index: {}]   ;;  %s2719_s5 = inlined_call_operand.vmem [shape: f32[1,256], index: 5, kind: input, shape index: {}]   ;;  %s2720_s6 = inlined_call_operand.vmem [shape: f32[128,128], index: 6, kind: input, shape index: {}]   ;;  %s2721_s7 = inlined_call_operand.vmem [shape: f32[1,128], index: 7, kind: input, shape index: {}]   ;;  %s2722_s8 = inlined_call_operand.hbm [shape: f32[1,128], index: 8, kind: output, shape index: {}]  }
   0x1   :  { %v30_v0 = vld [vmem:[%s2714_s0] sm:$0xff]  ;;  %v31_v1 = vld [vmem:[%s2714_s0 + $0x8] sm:$0xff]  ;;  %v32_v2 = vld [vmem:[%s2714_s0 + $0x10] sm:$0xff] }
   0x2   :  { %v1718_v3 = vpack.c.bf16 %v31_v1, %v30_v0  ;;  %v33_v4 = vld [vmem:[%s2714_s0 + $0x18] sm:$0xff]  ;;  %v34_v6 = vld [vmem:[%s2714_s0 + $0x20] sm:$0xff]  ;;  %v35_v7 = vld [vmem:[%s2714_s0 + $0x28] sm:$0xff] }
   0x3   :  { %v1722_v5 = vpack.c.bf16 %v33_v4, %v32_v2  ;;  %v1726_v8 = vpack.c.bf16 %v35_v7, %v34_v6  ;;  %v80_v9 = vld [vmem:[%s2717_s3] sm:$0xff]  ;;  %v36_v10 = vld [vmem:[%s2714_s0 + $0x30] sm:$0xff]  ;;  %v37_v11 = vld [vmem:[%s2714_s0 + $0x38] sm:$0xff] }
   0x4   :  { %1719 = vmatprep.subr.bf16.mxu1 %v1718_v3  ;;  %1491 = vmatprep.mubr.f32.mxu1 %v80_v9  ;;  %v1730_v12 = vpack.c.bf16 %v37_v11, %v36_v10  ;;  %v38_v13 = vld [vmem:[%s2714_s0 + $0x40] sm:$0xff]  ;;  %v39_v14 = vld [vmem:[%s2714_s0 + $0x48] sm:$0xff] }
   0x5   :  { %1721 = vmatpush3.bf16.msra.mxu1 %v1718_v3 }
   0x6   :  { %1723 = vmatprep.subr.bf16.mxu1 %v1722_v5 }
   0x9   :  { %1725 = vmatpush3.bf16.msra.mxu1 %v1722_v5 }
   0xa   :  { %1727 = vmatprep.subr.bf16.mxu1 %v1726_v8 }
   0xb   :  { %13 = vsyncpa [#allocation3], 0  ;;  %v1734_v15 = vpack.c.bf16 %v39_v14, %v38_v13  ;;  %v40_v16 = vld [vmem:[%s2714_s0 + $0x50] sm:$0xff]  ;;  %v41_v17 = vld [vmem:[%s2714_s0 + $0x58] sm:$0xff]  ;;  %vm1996_vm0 = vmmov 0   ;;  %s1997_s16 = smov [#allocation2]  }
   0xc   :  { %v1738_v18 = vpack.c.bf16 %v41_v17, %v40_v16  ;;  %v42_v19 = vld [vmem:[%s2714_s0 + $0x60] sm:$0xff]  ;;  %v43_v20 = vld [vmem:[%s2714_s0 + $0x68] sm:$0xff]  ;;  %v44_v22 = vld [vmem:[%s2714_s0 + $0x70] sm:$0xff]  ;;  %s1274_s17 = sshll.u32 %s1997_s16, 4  ;;  %s1275_s17 = int_to_ptr.vmem [resolvable:$true] %s1274_s17 }
   0xd   :  { %1729 = vmatpush3.bf16.msra.mxu1 %v1726_v8  ;;  %v1742_v21 = vpack.c.bf16 %v43_v20, %v42_v19  ;;  %v45_v23 = vld [vmem:[%s2714_s0 + $0x78] sm:$0xff]  ;;  %v81_v25 = vld [vmem:[%s2717_s3 + $0x8] sm:$0xff]  ;;  %v82_v26 = vld [vmem:[%s2717_s3 + $0x10] sm:$0xff]  ;;  %s1970_s18 = scalar_lea.vmem %s1275_s17, 16  ;;  %s1974_s19 = scalar_lea.vmem %s1275_s17, 32 }
   0xe   :  { %1731 = vmatprep.subr.bf16.mxu1 %v1730_v12  ;;  %v1746_v24 = vpack.c.bf16 %v45_v23, %v44_v22  ;;  %v83_v27 = vld [vmem:[%s2717_s3 + $0x18] sm:$0xff]  ;;  %v84_v28 = vld [vmem:[%s2717_s3 + $0x20] sm:$0xff]  ;;  %v85_v29 = vld [vmem:[%s2717_s3 + $0x28] sm:$0xff]  ;;  %p1971_p0 = scmp.ne.s32.totalorder %s1275_s17, %s1970_s18  ;;  %p1975_p1 = scmp.lt.s32.totalorder %s1275_s17, %s1275_s17 }
   0xf   :  { %v86_v30 = vld [vmem:[%s2717_s3 + $0x30] sm:$0xff]  ;;  %v87_v31 = vld [vmem:[%s2717_s3 + $0x38] sm:$0xff]  ;;  %v88_v32 = vld [vmem:[%s2717_s3 + $0x40] sm:$0xff]  ;;  %p1976_p2 = scmp.lt.s32.totalorder %s1974_s19, %s1970_s18 }
  0x10   :  { %v89_v33 = vld [vmem:[%s2717_s3 + $0x48] sm:$0xff]  ;;  %v90_v34 = vld [vmem:[%s2717_s3 + $0x50] sm:$0xff]  ;;  %v91_v35 = vld [vmem:[%s2717_s3 + $0x58] sm:$0xff] }
  0x11   :  { %1733 = vmatpush3.bf16.msra.mxu1 %v1730_v12  ;;  %v92_v36 = vld [vmem:[%s2717_s3 + $0x60] sm:$0xff]  ;;  %v93_v37 = vld [vmem:[%s2717_s3 + $0x68] sm:$0xff]  ;;  %v94_v38 = vld [vmem:[%s2717_s3 + $0x70] sm:$0xff]  ;;  %p1977_p3 = por %p1976_p2, %p1975_p1 }
  0x12   :  { %1735 = vmatprep.subr.bf16.mxu1 %v1734_v15  ;;  %v95_v39 = vld [vmem:[%s2717_s3 + $0x78] sm:$0xff]  ;;  %v2142_v40 = vld [vmem:[%s2715_s1] sm:$0xff]  ;;  %v2148_v1 = vld [vmem:[%s2715_s1 + $0x8] sm:$0xff] }
  0x13   :  { %v2153_v2 = vld [vmem:[%s2715_s1 + $0x10] sm:$0xff]  ;;  %v2160_v3 = vld [vmem:[%s2715_s1 + $0x18] sm:$0xff]  ;;  %v2165_v4 = vld [vmem:[%s2715_s1 + $0x20] sm:$0xff]  ;;  %p1978_p4 = pnand %p1977_p3, %p1971_p0 }
  0x14   :  { %v2172_v5 = vld [vmem:[%s2715_s1 + $0x28] sm:$0xff]  ;;  %v2177_v6 = vld [vmem:[%s2715_s1 + $0x30] sm:$0xff]  ;;  %v2184_v7 = vld [vmem:[%s2715_s1 + $0x38] sm:$0xff] }
  0x15   :  { %1737 = vmatpush3.bf16.msra.mxu1 %v1734_v15  ;;  %v2189_v8 = vld [vmem:[%s2715_s1 + $0x40] sm:$0xff]  ;;  %v2196_v9 = vld [vmem:[%s2715_s1 + $0x48] sm:$0xff]  ;;  %v2201_v10 = vld [vmem:[%s2715_s1 + $0x50] sm:$0xff] }
  0x16   :  { %1739 = vmatprep.subr.bf16.mxu1 %v1738_v18  ;;  %v2208_v11 = vld [vmem:[%s2715_s1 + $0x58] sm:$0xff]  ;;  %v2213_v12 = vld [vmem:[%s2715_s1 + $0x60] sm:$0xff]  ;;  %v2220_v13 = vld [vmem:[%s2715_s1 + $0x68] sm:$0xff] }
  0x17   :  { %v2225_v14 = vld [vmem:[%s2715_s1 + $0x70] sm:$0xff]  ;;  %v2232_v15 = vld [vmem:[%s2715_s1 + $0x78] sm:$0xff]  ;;  %v1282_v16 = vld [vmem:[%s2717_s3 + $0x80] sm:$0xff] }
  0x18   :  { %1603 = vmatprep.mubr.f32.mxu0 %v1282_v16  ;;  %v1291_v16 = vld [vmem:[%s2717_s3 + $0xc8] sm:$0xff] }
  0x19   :  { %1741 = vmatpush3.bf16.msra.mxu1 %v1738_v18 }
  0x1a   :  { %1743 = vmatprep.subr.bf16.mxu1 %v1742_v21 }
  0x1d   :  { %1745 = vmatpush3.bf16.msra.mxu1 %v1742_v21 }
  0x1e   :  { %1747 = vmatprep.subr.bf16.mxu1 %v1746_v24 }
  0x21   :  { %1749 = vmatpush3.bf16.msra.mxu1 %v1746_v24 }
  0x24   :  { %1492 = vmatmul.mubr.f32.vlgmr.msra.gmra.mrb[0].mxu1 %v81_v25 }
  0x25   :  { %1494 = vmatprep.mubr.f32.mxu1 %v82_v26 }
  0x28   :  { %1495 = vmatmul.mubr.f32.gmra.mrb[2].mxu1 %v83_v27 }
  0x29   :  { %1497 = vmatprep.mubr.f32.mxu1 %v84_v28 }
  0x2c   :  { %1498 = vmatmul.mubr.f32.gmra.mrb[4].mxu1 %v85_v29 }
  0x2d   :  { %1500 = vmatprep.mubr.f32.mxu1 %v86_v30 }
  0x30   :  { %1501 = vmatmul.mubr.f32.gmra.mrb[6].mxu1 %v87_v31 }
  0x31   :  { %1503 = vmatprep.mubr.f32.mxu1 %v88_v32 }
  0x34   :  { %1504 = vmatmul.mubr.f32.gmra.mrb[8].mxu1 %v89_v33 }
  0x35   :  { %1506 = vmatprep.mubr.f32.mxu1 %v90_v34 }
  0x38   :  { %1507 = vmatmul.mubr.f32.gmra.mrb[10].mxu1 %v91_v35 }
  0x39   :  { %1509 = vmatprep.mubr.f32.mxu1 %v92_v36 }
  0x3c   :  { %1510 = vmatmul.mubr.f32.gmra.mrb[12].mxu1 %v93_v37 }
  0x3d   :  { %1512 = vmatprep.mubr.f32.mxu1 %v94_v38 }
  0x40   :  { %1513 = vmatmul.mubr.f32.gmra.mrb[14].mxu1 %v95_v39 }
  0x41   :  { %1547 = vmatprep.mubr.f32.mxu1 %v2142_v40 }
  0xf7   :  { %v1493_v41 = vpop.f32.mrb[0].mxu1 }
  0xf8   :  { %v162_v42 = vpop.f32.mrb[1].mxu1 }
  0xf9   :  { %v1750_v43 = vpack.c.bf16 %v1493_v41, %v162_v42 }
  0xfb   :  { %v1496_v44 = vpop.f32.mrb[2].mxu1  ;;  %1751 = vmatprep.subr.bf16.mxu1 %v1750_v43 }
  0xfc   :  { %v172_v45 = vpop.f32.mrb[3].mxu1  ;;  %1753 = vmatpush3.bf16.msra.mxu1 %v1750_v43 }
  0xfd   :  { %v1754_v46 = vpack.c.bf16 %v1496_v44, %v172_v45 }
  0xff   :  { %v1499_v47 = vpop.f32.mrb[4].mxu1  ;;  %1755 = vmatprep.subr.bf16.mxu1 %v1754_v46 }
 0x100   :  { %v182_v48 = vpop.f32.mrb[5].mxu1  ;;  %1757 = vmatpush3.bf16.msra.mxu1 %v1754_v46 }
 0x101   :  { %v1758_v49 = vpack.c.bf16 %v1499_v47, %v182_v48 }
 0x103   :  { %v1502_v50 = vpop.f32.mrb[6].mxu1  ;;  %1759 = vmatprep.subr.bf16.mxu1 %v1758_v49 }
 0x104   :  { %v192_v51 = vpop.f32.mrb[7].mxu1  ;;  %1761 = vmatpush3.bf16.msra.mxu1 %v1758_v49 }
 0x105   :  { %v1762_v52 = vpack.c.bf16 %v1502_v50, %v192_v51 }
 0x107   :  { %v1505_v53 = vpop.f32.mrb[8].mxu1  ;;  %1763 = vmatprep.subr.bf16.mxu1 %v1762_v52 }
 0x108   :  { %v202_v54 = vpop.f32.mrb[9].mxu1  ;;  %1765 = vmatpush3.bf16.msra.mxu1 %v1762_v52 }
 0x109   :  { %v1766_v55 = vpack.c.bf16 %v1505_v53, %v202_v54 }
 0x10b   :  { %v1508_v56 = vpop.f32.mrb[10].mxu1  ;;  %1767 = vmatprep.subr.bf16.mxu1 %v1766_v55 }
 0x10c   :  { %v212_v57 = vpop.f32.mrb[11].mxu1  ;;  %1769 = vmatpush3.bf16.msra.mxu1 %v1766_v55 }
 0x10d   :  { %v1770_v58 = vpack.c.bf16 %v1508_v56, %v212_v57  ;;  %v1283_v57 = vld [vmem:[%s2717_s3 + $0x88] sm:$0xff] }
 0x10f   :  { %v1511_v59 = vpop.f32.mrb[12].mxu1  ;;  %1771 = vmatprep.subr.bf16.mxu1 %v1770_v58 }
 0x110   :  { %v222_v60 = vpop.f32.mrb[13].mxu1  ;;  %1773 = vmatpush3.bf16.msra.mxu1 %v1770_v58  ;;  %v1284_v58 = vld [vmem:[%s2717_s3 + $0x90] sm:$0xff] }
 0x111   :  { %v1774_v61 = vpack.c.bf16 %v1511_v59, %v222_v60  ;;  %v1285_v59 = vld [vmem:[%s2717_s3 + $0x98] sm:$0xff]  ;;  %v1286_v60 = vld [vmem:[%s2717_s3 + $0xa0] sm:$0xff] }
 0x113   :  { %v1514_v62 = vpop.f32.mrb[14].mxu1  ;;  %1775 = vmatprep.subr.bf16.mxu1 %v1774_v61 }
 0x114   :  { %v232_v63 = vpop.f32.mrb[15].mxu1  ;;  %1777 = vmatpush3.bf16.msra.mxu1 %v1774_v61  ;;  %v1287_v61 = vld [vmem:[%s2717_s3 + $0xa8] sm:$0xff] }
 0x115   :  { %v1778_v0 = vpack.c.bf16 %v1514_v62, %v232_v63  ;;  %v1288_v62 = vld [vmem:[%s2717_s3 + $0xb0] sm:$0xff]  ;;  %v1289_v63 = vld [vmem:[%s2717_s3 + $0xb8] sm:$0xff] }
 0x117   :  { %1779 = vmatprep.subr.bf16.mxu1 %v1778_v0 }
 0x118   :  { %1781 = vmatpush3.bf16.msra.mxu1 %v1778_v0  ;;  %v1290_v0 = vld [vmem:[%s2717_s3 + $0xc0] sm:$0xff] }
 0x11b   :  { %1548 = vmatmul.mubr.f32.vlgmr.msra.gmra.mrb[16].mxu1 %v2148_v1 }
 0x11c   :  { %1550 = vmatprep.mubr.f32.mxu1 %v2153_v2 }
 0x11f   :  { %1551 = vmatmul.mubr.f32.gmra.mrb[18].mxu1 %v2160_v3 }
 0x120   :  { %1553 = vmatprep.mubr.f32.mxu1 %v2165_v4 }
 0x123   :  { %1554 = vmatmul.mubr.f32.gmra.mrb[20].mxu1 %v2172_v5 }
 0x124   :  { %1556 = vmatprep.mubr.f32.mxu1 %v2177_v6 }
 0x127   :  { %1557 = vmatmul.mubr.f32.gmra.mrb[22].mxu1 %v2184_v7 }
 0x128   :  { %1559 = vmatprep.mubr.f32.mxu1 %v2189_v8 }
 0x12b   :  { %1560 = vmatmul.mubr.f32.gmra.mrb[24].mxu1 %v2196_v9 }
 0x12c   :  { %1562 = vmatprep.mubr.f32.mxu1 %v2201_v10 }
 0x12f   :  { %1563 = vmatmul.mubr.f32.gmra.mrb[26].mxu1 %v2208_v11 }
 0x130   :  { %1565 = vmatprep.mubr.f32.mxu1 %v2213_v12 }
 0x133   :  { %1566 = vmatmul.mubr.f32.gmra.mrb[28].mxu1 %v2220_v13 }
 0x134   :  { %1568 = vmatprep.mubr.f32.mxu1 %v2225_v14 }
 0x137   :  { %1569 = vmatmul.mubr.f32.gmra.mrb[30].mxu1 %v2232_v15 }
 0x138   :  { %1659 = vmatprep.mubr.f32.mxu1 %v2142_v40 }
 0x1ee   :  { %v2239_v17 = vpop.f32.mrb[16].mxu1 }
 0x1ef   :  { %v387_v18 = vmax.f32 %v2239_v17, 0.0  ;;  %v2242_v19 = vpop.f32.mrb[17].mxu1 }
 0x1f0   :  { %v386_v20 = vmax.f32 %v2242_v19, 0.0 }
 0x1f2   :  { %v2245_v21 = vpop.f32.mrb[18].mxu1  ;;  %v1782_v22 = vpack.c.bf16 %v387_v18, %v386_v20 }
 0x1f3   :  { %v389_v23 = vmax.f32 %v2245_v21, 0.0  ;;  %v2252_v24 = vpop.f32.mrb[19].mxu1 }
 0x1f4   :  { %v388_v25 = vmax.f32 %v2252_v24, 0.0  ;;  %1783 = vmatprep.subr.bf16.mxu0 %v1782_v22 }
 0x1f5   :  { %1785 = vmatpush3.bf16.msra.mxu0 %v1782_v22  ;;  %v1292_v22 = vld [vmem:[%s2717_s3 + $0xd0] sm:$0xff] }
 0x1f6   :  { %v1786_v26 = vpack.c.bf16 %v389_v23, %v388_v25  ;;  %v2259_v27 = vpop.f32.mrb[20].mxu1 }
 0x1f7   :  { %v391_v28 = vmax.f32 %v2259_v27, 0.0  ;;  %v2262_v29 = vpop.f32.mrb[21].mxu1 }
 0x1f8   :  { %v390_v30 = vmax.f32 %v2262_v29, 0.0  ;;  %1787 = vmatprep.subr.bf16.mxu0 %v1786_v26 }
 0x1f9   :  { %1789 = vmatpush3.bf16.msra.mxu0 %v1786_v26  ;;  %v1293_v26 = vld [vmem:[%s2717_s3 + $0xd8] sm:$0xff] }
 0x1fa   :  { %v1790_v31 = vpack.c.bf16 %v391_v28, %v390_v30  ;;  %v2269_v32 = vpop.f32.mrb[22].mxu1 }
 0x1fb   :  { %v393_v33 = vmax.f32 %v2269_v32, 0.0  ;;  %v2272_v34 = vpop.f32.mrb[23].mxu1 }
 0x1fc   :  { %v392_v35 = vmax.f32 %v2272_v34, 0.0  ;;  %1791 = vmatprep.subr.bf16.mxu0 %v1790_v31 }
 0x1fd   :  { %1793 = vmatpush3.bf16.msra.mxu0 %v1790_v31  ;;  %v1294_v31 = vld [vmem:[%s2717_s3 + $0xe0] sm:$0xff] }
 0x1fe   :  { %v1794_v36 = vpack.c.bf16 %v393_v33, %v392_v35  ;;  %v2279_v37 = vpop.f32.mrb[24].mxu1 }
 0x1ff   :  { %v395_v38 = vmax.f32 %v2279_v37, 0.0  ;;  %v2282_v39 = vpop.f32.mrb[25].mxu1 }
 0x200   :  { %v394_v40 = vmax.f32 %v2282_v39, 0.0  ;;  %1795 = vmatprep.subr.bf16.mxu0 %v1794_v36 }
 0x201   :  { %1797 = vmatpush3.bf16.msra.mxu0 %v1794_v36  ;;  %v1295_v36 = vld [vmem:[%s2717_s3 + $0xe8] sm:$0xff] }
 0x202   :  { %v1798_v41 = vpack.c.bf16 %v395_v38, %v394_v40  ;;  %v2289_v42 = vpop.f32.mrb[26].mxu1 }
 0x203   :  { %v397_v43 = vmax.f32 %v2289_v42, 0.0  ;;  %v2292_v44 = vpop.f32.mrb[27].mxu1 }
 0x204   :  { %v396_v45 = vmax.f32 %v2292_v44, 0.0  ;;  %1799 = vmatprep.subr.bf16.mxu0 %v1798_v41 }
 0x205   :  { %1801 = vmatpush3.bf16.msra.mxu0 %v1798_v41  ;;  %v1296_v41 = vld [vmem:[%s2717_s3 + $0xf0] sm:$0xff] }
 0x206   :  { %v1802_v46 = vpack.c.bf16 %v397_v43, %v396_v45  ;;  %v2299_v47 = vpop.f32.mrb[28].mxu1 }
 0x207   :  { %v399_v48 = vmax.f32 %v2299_v47, 0.0  ;;  %v2302_v49 = vpop.f32.mrb[29].mxu1  ;;  %v1181_v47 = vld [vmem:[%s2720_s6] sm:$0xff] }
 0x208   :  { %v398_v50 = vmax.f32 %v2302_v49, 0.0  ;;  %1803 = vmatprep.subr.bf16.mxu0 %v1802_v46 }
 0x209   :  { %1805 = vmatpush3.bf16.msra.mxu0 %v1802_v46  ;;  %v1297_v46 = vld [vmem:[%s2717_s3 + $0xf8] sm:$0xff] }
 0x20a   :  { %v1806_v51 = vpack.c.bf16 %v399_v48, %v398_v50  ;;  %v2309_v52 = vpop.f32.mrb[30].mxu1 }
 0x20b   :  { %v401_v53 = vmax.f32 %v2309_v52, 0.0  ;;  %v2312_v54 = vpop.f32.mrb[31].mxu1  ;;  %v1184_v52 = vld [vmem:[%s2720_s6 + $0x18] sm:$0xff] }
 0x20c   :  { %v400_v55 = vmax.f32 %v2312_v54, 0.0  ;;  %1807 = vmatprep.subr.bf16.mxu0 %v1806_v51  ;;  %v1183_v54 = vld [vmem:[%s2720_s6 + $0x10] sm:$0xff] }
 0x20d   :  { %1809 = vmatpush3.bf16.msra.mxu0 %v1806_v51  ;;  %v742_v51 = vld [vmem:[%s2718_s4 + $0x8] sm:$0xff] }
 0x20e   :  { %v1810_v56 = vpack.c.bf16 %v401_v53, %v400_v55 }
 0x210   :  { %1811 = vmatprep.subr.bf16.mxu0 %v1810_v56 }
 0x211   :  { %1813 = vmatpush3.bf16.msra.mxu0 %v1810_v56  ;;  %v744_v56 = vld [vmem:[%s2718_s4 + $0x18] sm:$0xff] }
 0x214   :  { %1604 = vmatmul.mubr.f32.vlgmr.msra.gmra.mrb[0].mxu0 %v1283_v57  ;;  %v741_v57 = vld [vmem:[%s2718_s4] sm:$0xff] }
 0x215   :  { %1606 = vmatprep.mubr.f32.mxu0 %v1284_v58  ;;  %v1846_v58 = vpack.c.bf16 %v744_v56, %v742_v51  ;;  %v754_v51 = vld [vmem:[%s2718_s4 + $0x68] sm:$0xff]  ;;  %v756_v56 = vld [vmem:[%s2718_s4 + $0x78] sm:$0xff] }
 0x217   :  { %1847 = vmatprep.subr.bf16.mxu0 %v1846_v58  ;;  %v1858_v58 = vpack.c.bf16 %v756_v56, %v754_v51  ;;  %v763_v51 = vld [vmem:[%s2718_s4 + $0xb0] sm:$0xff]  ;;  %v766_v56 = vld [vmem:[%s2718_s4 + $0xc8] sm:$0xff] }
 0x218   :  { %1607 = vmatmul.mubr.f32.gmra.mrb[2].mxu0 %v1285_v59  ;;  %v743_v59 = vld [vmem:[%s2718_s4 + $0x10] sm:$0xff] }
 0x219   :  { %1609 = vmatprep.mubr.f32.mxu0 %v1286_v60  ;;  %v746_v60 = vld [vmem:[%s2718_s4 + $0x28] sm:$0xff] }
 0x21c   :  { %1610 = vmatmul.mubr.f32.gmra.mrb[4].mxu0 %v1287_v61  ;;  %v748_v61 = vld [vmem:[%s2718_s4 + $0x38] sm:$0xff] }
 0x21d   :  { %1612 = vmatprep.mubr.f32.mxu0 %v1288_v62  ;;  %v1848_v62 = vpack.c.bf16 %v743_v59, %v741_v57  ;;  %v753_v59 = vld [vmem:[%s2718_s4 + $0x60] sm:$0xff] }
 0x21f   :  { %1849 = vmatpush1.bf16.msra.mxu0 %v1848_v62  ;;  %v760_v62 = vld [vmem:[%s2718_s4 + $0x98] sm:$0xff] }
 0x220   :  { %1613 = vmatmul.mubr.f32.gmra.mrb[6].mxu0 %v1289_v63  ;;  %v1850_v63 = vpack.c.bf16 %v748_v61, %v746_v60  ;;  %v755_v60 = vld [vmem:[%s2718_s4 + $0x70] sm:$0xff]  ;;  %v758_v61 = vld [vmem:[%s2718_s4 + $0x88] sm:$0xff] }
 0x221   :  { %1615 = vmatprep.mubr.f32.mxu0 %v1290_v0  ;;  %v745_v0 = vld [vmem:[%s2718_s4 + $0x20] sm:$0xff] }
 0x222   :  { %1851 = vmatprep.subr.bf16.mxu0 %v1850_v63  ;;  %v1860_v63 = vpack.c.bf16 %v755_v60, %v753_v59  ;;  %v765_v60 = vld [vmem:[%s2718_s4 + $0xc0] sm:$0xff] }
 0x224   :  { %1616 = vmatmul.mubr.f32.gmra.mrb[8].mxu0 %v1291_v16  ;;  %v747_v16 = vld [vmem:[%s2718_s4 + $0x30] sm:$0xff] }
 0x225   :  { %1618 = vmatprep.mubr.f32.mxu0 %v1292_v22  ;;  %v750_v22 = vld [vmem:[%s2718_s4 + $0x48] sm:$0xff] }
 0x228   :  { %1619 = vmatmul.mubr.f32.gmra.mrb[10].mxu0 %v1293_v26  ;;  %v752_v26 = vld [vmem:[%s2718_s4 + $0x58] sm:$0xff] }
 0x229   :  { %1621 = vmatprep.mubr.f32.mxu0 %v1294_v31  ;;  %v1852_v31 = vpack.c.bf16 %v747_v16, %v745_v0  ;;  %v1862_v0 = vpack.c.bf16 %v760_v62, %v758_v61  ;;  %v757_v16 = vld [vmem:[%s2718_s4 + $0x80] sm:$0xff]  ;;  %v767_v61 = vld [vmem:[%s2718_s4 + $0xd0] sm:$0xff] }
 0x22a   :  { %v1872_v62 = vpack.c.bf16 %v767_v61, %v765_v60 }
 0x22b   :  { %1853 = vmatpush1.bf16.msra.mxu0 %v1852_v31  ;;  %v764_v31 = vld [vmem:[%s2718_s4 + $0xb8] sm:$0xff] }
 0x22c   :  { %1622 = vmatmul.mubr.f32.gmra.mrb[12].mxu0 %v1295_v36  ;;  %v1854_v36 = vpack.c.bf16 %v752_v26, %v750_v22  ;;  %v759_v22 = vld [vmem:[%s2718_s4 + $0x90] sm:$0xff]  ;;  %v762_v26 = vld [vmem:[%s2718_s4 + $0xa8] sm:$0xff] }
 0x22d   :  { %1624 = vmatprep.mubr.f32.mxu0 %v1296_v41  ;;  %v749_v41 = vld [vmem:[%s2718_s4 + $0x40] sm:$0xff] }
 0x22e   :  { %1855 = vmatprep.subr.bf16.mxu0 %v1854_v36  ;;  %v1864_v36 = vpack.c.bf16 %v759_v22, %v757_v16 }
 0x230   :  { %1625 = vmatmul.mubr.f32.gmra.mrb[14].mxu0 %v1297_v46  ;;  %v751_v46 = vld [vmem:[%s2718_s4 + $0x50] sm:$0xff] }
 0x231   :  { %v1856_v57 = vpack.c.bf16 %v751_v46, %v749_v41  ;;  %v1866_v41 = vpack.c.bf16 %v764_v31, %v762_v26  ;;  %v761_v46 = vld [vmem:[%s2718_s4 + $0xa0] sm:$0xff] }
 0x233   :  { %1857 = vmatpush1.bf16.msra.mxu0 %v1856_v57  ;;  %v768_v57 = vld [vmem:[%s2718_s4 + $0xd8] sm:$0xff] }
 0x234   :  { %1859 = vmatprep.subr.bf16.mxu0 %v1858_v58  ;;  %v1868_v58 = vpack.c.bf16 %v763_v51, %v761_v46  ;;  %v1870_v59 = vpack.c.bf16 %v768_v57, %v766_v56 }
 0x237   :  { %1861 = vmatpush1.bf16.msra.mxu0 %v1860_v63 }
 0x238   :  { %1863 = vmatprep.subr.bf16.mxu0 %v1862_v0 }
 0x23b   :  { %1865 = vmatpush1.bf16.msra.mxu0 %v1864_v36 }
 0x23c   :  { %1867 = vmatprep.subr.bf16.mxu0 %v1866_v41 }
 0x23f   :  { %1869 = vmatpush1.bf16.msra.mxu0 %v1868_v58 }
 0x240   :  { %1871 = vmatprep.subr.bf16.mxu0 %v1870_v59 }
 0x243   :  { %1873 = vmatpush1.bf16.msra.mxu0 %v1872_v62 }
 0x2e7   :  { %v1605_v63 = vpop.f32.mrb[0].mxu0 }
 0x2e8   :  { %v485_v0 = vpop.f32.mrb[1].mxu0 }
 0x2e9   :  { %v1814_v16 = vpack.c.bf16 %v1605_v63, %v485_v0 }
 0x2eb   :  { %v1608_v22 = vpop.f32.mrb[2].mxu0  ;;  %1815 = vmatprep.subr.bf16.mxu1 %v1814_v16 }
 0x2ec   :  { %v495_v26 = vpop.f32.mrb[3].mxu0  ;;  %1817 = vmatpush3.bf16.msra.mxu1 %v1814_v16 }
 0x2ed   :  { %v1818_v31 = vpack.c.bf16 %v1608_v22, %v495_v26 }
 0x2ef   :  { %v1611_v36 = vpop.f32.mrb[4].mxu0  ;;  %1819 = vmatprep.subr.bf16.mxu1 %v1818_v31 }
 0x2f0   :  { %v505_v41 = vpop.f32.mrb[5].mxu0  ;;  %1821 = vmatpush3.bf16.msra.mxu1 %v1818_v31 }
 0x2f1   :  { %v1822_v46 = vpack.c.bf16 %v1611_v36, %v505_v41 }
 0x2f3   :  { %v1614_v51 = vpop.f32.mrb[6].mxu0  ;;  %1823 = vmatprep.subr.bf16.mxu1 %v1822_v46 }
 0x2f4   :  { %v515_v56 = vpop.f32.mrb[7].mxu0  ;;  %1825 = vmatpush3.bf16.msra.mxu1 %v1822_v46 }
 0x2f5   :  { %v1826_v57 = vpack.c.bf16 %v1614_v51, %v515_v56 }
 0x2f7   :  { %v1617_v58 = vpop.f32.mrb[8].mxu0  ;;  %1827 = vmatprep.subr.bf16.mxu1 %v1826_v57 }
 0x2f8   :  { %v525_v59 = vpop.f32.mrb[9].mxu0  ;;  %1829 = vmatpush3.bf16.msra.mxu1 %v1826_v57 }
 0x2f9   :  { %v1830_v60 = vpack.c.bf16 %v1617_v58, %v525_v59 }
 0x2fb   :  { %v1620_v61 = vpop.f32.mrb[10].mxu0  ;;  %1831 = vmatprep.subr.bf16.mxu1 %v1830_v60 }
 0x2fc   :  { %v535_v62 = vpop.f32.mrb[11].mxu0  ;;  %1833 = vmatpush3.bf16.msra.mxu1 %v1830_v60 }
 0x2fd   :  { %v1834_v63 = vpack.c.bf16 %v1620_v61, %v535_v62 }
 0x2ff   :  { %v1623_v0 = vpop.f32.mrb[12].mxu0  ;;  %1835 = vmatprep.subr.bf16.mxu1 %v1834_v63 }
 0x300   :  { %v545_v16 = vpop.f32.mrb[13].mxu0  ;;  %1837 = vmatpush3.bf16.msra.mxu1 %v1834_v63 }
 0x301   :  { %v1838_v22 = vpack.c.bf16 %v1623_v0, %v545_v16 }
 0x303   :  { %v1626_v26 = vpop.f32.mrb[14].mxu0  ;;  %1839 = vmatprep.subr.bf16.mxu1 %v1838_v22 }
 0x304   :  { %v555_v31 = vpop.f32.mrb[15].mxu0  ;;  %1841 = vmatpush3.bf16.msra.mxu1 %v1838_v22 }
 0x305   :  { %v1842_v36 = vpack.c.bf16 %v1626_v26, %v555_v31  ;;  %v1995_v31 = vmov 0.0|0.0  }
 0x307   :  { %1843 = vmatprep.subr.bf16.mxu1 %v1842_v36 }
 0x308   :  { %1845 = vmatpush3.bf16.msra.mxu1 %v1842_v36  ;;  %v1186_v36 = vld [vmem:[%s2720_s6 + $0x28] sm:$0xff] }
 0x309   :  { %1878 = vmatprep.subr.bf16.mxu1 %v1995_v31 }
 0x30b   :  { %1660 = vmatmul.mubr.f32.vlgmr.msra.gmra.mrb[32].mxu1 %v2148_v1  ;;  %v770_v1 = vld [vmem:[%s2718_s4 + $0xe8] sm:$0xff] }
 0x30c   :  { %1662 = vmatprep.mubr.f32.mxu1 %v2153_v2  ;;  %v772_v2 = vld [vmem:[%s2718_s4 + $0xf8] sm:$0xff] }
 0x30f   :  { %1663 = vmatmul.mubr.f32.gmra.mrb[34].mxu1 %v2160_v3  ;;  %v1874_v3 = vpack.c.bf16 %v772_v2, %v770_v1  ;;  %v1187_v2 = vld [vmem:[%s2720_s6 + $0x30] sm:$0xff] }
 0x310   :  { %1665 = vmatprep.mubr.f32.mxu1 %v2165_v4  ;;  %v769_v4 = vld [vmem:[%s2718_s4 + $0xe0] sm:$0xff] }
 0x311   :  { %1875 = vmatprep.subr.bf16.mxu0 %v1874_v3  ;;  %v1188_v3 = vld [vmem:[%s2720_s6 + $0x38] sm:$0xff] }
 0x313   :  { %1666 = vmatmul.mubr.f32.gmra.mrb[36].mxu1 %v2172_v5  ;;  %v771_v5 = vld [vmem:[%s2718_s4 + $0xf0] sm:$0xff] }
 0x314   :  { %1668 = vmatprep.mubr.f32.mxu1 %v2177_v6  ;;  %v1876_v6 = vpack.c.bf16 %v771_v5, %v769_v4  ;;  %v1888_v4 = vpack.c.bf16 %v1188_v3, %v1187_v2  ;;  %v1189_v5 = vld [vmem:[%s2720_s6 + $0x40] sm:$0xff] }
 0x316   :  { %1877 = vmatpush1.bf16.msra.mxu0 %v1876_v6  ;;  %v1190_v6 = vld [vmem:[%s2720_s6 + $0x48] sm:$0xff] }
 0x317   :  { %1669 = vmatmul.mubr.f32.gmra.mrb[38].mxu1 %v2184_v7  ;;  %v1994_v7 = vmov 0.0  }
 0x318   :  { %1671 = vmatprep.mubr.f32.mxu1 %v2189_v8  ;;  %848 = vmatprep.mubr.f32.mxu0 %v1994_v7 }
 0x31b   :  { %1672 = vmatmul.mubr.f32.gmra.mrb[40].mxu1 %v2196_v9 }
 0x31c   :  { %1674 = vmatprep.mubr.f32.mxu1 %v2201_v10 }
 0x31f   :  { %1675 = vmatmul.mubr.f32.gmra.mrb[42].mxu1 %v2208_v11 }
 0x320   :  { %1677 = vmatprep.mubr.f32.mxu1 %v2213_v12 }
 0x323   :  { %1678 = vmatmul.mubr.f32.gmra.mrb[44].mxu1 %v2220_v13 }
 0x324   :  { %1680 = vmatprep.mubr.f32.mxu1 %v2225_v14 }
 0x327   :  { %1681 = vmatmul.mubr.f32.gmra.mrb[46].mxu1 %v2232_v15 }
 0x328   :  { %1715 = vmatprep.mubr.msk.f32.mxu1 %vm1996_vm0, %v1994_v7 }
 0x3de   :  { %v1661_v8 = vpop.f32.mrb[32].mxu1 }
 0x3df   :  { %v630_v9 = vpop.f32.mrb[33].mxu1  ;;  %v710_v11 = vmax.f32 %v1661_v8, 0.0  ;;  %v1191_v8 = vld [vmem:[%s2720_s6 + $0x50] sm:$0xff] }
 0x3e0   :  { %v709_v10 = vmax.f32 %v630_v9, 0.0  ;;  %v1891_v9 = vpack.c.bf16 %v1190_v6, %v1189_v5 }
 0x3e1   :  { %v726_v15 = vadd.f32 %v710_v11, %v387_v18 }
 0x3e2   :  { %v725_v12 = vadd.f32 %v709_v10, %v386_v20  ;;  %v1664_v13 = vpop.f32.mrb[34].mxu1  ;;  %v1192_v10 = vld [vmem:[%s2720_s6 + $0x58] sm:$0xff] }
 0x3e3   :  { %v640_v14 = vpop.f32.mrb[35].mxu1  ;;  %v712_v56 = vmax.f32 %v1664_v13, 0.0  ;;  %v1894_v11 = vpack.c.bf16 %v1192_v10, %v1191_v8  ;;  %v1194_v13 = vld [vmem:[%s2720_s6 + $0x68] sm:$0xff] }
 0x3e4   :  { %849 = vmatmul.mubr.f32.vlgmr.msra.gmra.mrb[16].mxu0 %v725_v12  ;;  %v711_v41 = vmax.f32 %v640_v14, 0.0  ;;  %v1193_v12 = vld [vmem:[%s2720_s6 + $0x60] sm:$0xff] }
 0x3e5   :  { %854 = vmatprep.mubr.f32.mxu0 %v1994_v7  ;;  %v728_v58 = vadd.f32 %v712_v56, %v389_v23  ;;  %v1897_v14 = vpack.c.bf16 %v1194_v13, %v1193_v12  ;;  %v63_v12 = vld [vmem:[%s2716_s2 + $0x8] sm:$0xff] }
 0x3e6   :  { %v1667_v46 = vpop.f32.mrb[36].mxu1  ;;  %v727_v57 = vadd.f32 %v711_v41, %v388_v25 }
 0x3e7   :  { %v650_v51 = vpop.f32.mrb[37].mxu1  ;;  %v714_v60 = vmax.f32 %v1667_v46, 0.0  ;;  %v774_v46 = vlaneseq }
 0x3e8   :  { %855 = vmatmul.mubr.f32.gmra.mrb[18].mxu0 %v726_v15  ;;  %v713_v17 = vmax.f32 %v650_v51, 0.0  ;;  %v1195_v15 = vld [vmem:[%s2720_s6 + $0x70] sm:$0xff] }
 0x3e9   :  { %860 = vmatprep.mubr.f32.mxu0 %v1994_v7  ;;  %v730_v62 = vadd.f32 %v714_v60, %v391_v28  ;;  %v775_v51 = vshrl.u32 %v774_v46, 7 }
 0x3ea   :  { %v1670_v19 = vpop.f32.mrb[38].mxu1  ;;  %v729_v61 = vadd.f32 %v713_v17, %v390_v30 }
 0x3eb   :  { %v660_v20 = vpop.f32.mrb[39].mxu1  ;;  %v716_v0 = vmax.f32 %v1670_v19, 0.0  ;;  %v780_v56 = vsub.s32 1, %v775_v51 }
 0x3ec   :  { %861 = vmatmul.mubr.f32.gmra.mrb[20].mxu0 %v727_v57  ;;  %v715_v21 = vmax.f32 %v660_v20, 0.0  ;;  %v78_v57 = vld [vmem:[%s2719_s5] sm:$0x3] }
 0x3ed   :  { %866 = vmatprep.mubr.f32.mxu0 %v1994_v7  ;;  %v732_v22 = vadd.f32 %v716_v0, %v393_v33  ;;  %v2575_v19 = vrot.slane %v78_v57, %v780_v56 }
 0x3ee   :  { %v1673_v18 = vpop.f32.mrb[40].mxu1  ;;  %v731_v16 = vadd.f32 %v715_v21, %v392_v35 }
 0x3ef   :  { %v670_v59 = vpop.f32.mrb[41].mxu1  ;;  %v718_v28 = vmax.f32 %v1673_v18, 0.0 }
 0x3f0   :  { %867 = vmatmul.mubr.f32.gmra.mrb[22].mxu0 %v728_v58  ;;  %v717_v27 = vmax.f32 %v670_v59, 0.0 }
 0x3f1   :  { %872 = vmatprep.mubr.f32.mxu0 %v1994_v7  ;;  %v734_v34 = vadd.f32 %v718_v28, %v395_v38 }
 0x3f2   :  { %v1676_v24 = vpop.f32.mrb[42].mxu1  ;;  %v733_v26 = vadd.f32 %v717_v27, %v394_v40 }
 0x3f3   :  { %v680_v25 = vpop.f32.mrb[43].mxu1  ;;  %v720_v32 = vmax.f32 %v1676_v24, 0.0 }
 0x3f4   :  { %873 = vmatmul.mubr.f32.gmra.mrb[24].mxu0 %v729_v61  ;;  %v719_v35 = vmax.f32 %v680_v25, 0.0 }
 0x3f5   :  { %878 = vmatprep.mubr.f32.mxu0 %v1994_v7  ;;  %v736_v39 = vadd.f32 %v720_v32, %v397_v43 }
 0x3f6   :  { %v1679_v23 = vpop.f32.mrb[44].mxu1  ;;  %v735_v33 = vadd.f32 %v719_v35, %v396_v45 }
 0x3f7   :  { %v690_v63 = vpop.f32.mrb[45].mxu1  ;;  %v722_v37 = vmax.f32 %v1679_v23, 0.0 }
 0x3f8   :  { %879 = vmatmul.mubr.f32.gmra.mrb[26].mxu0 %v730_v62  ;;  %v721_v40 = vmax.f32 %v690_v63, 0.0 }
 0x3f9   :  { %884 = vmatprep.mubr.f32.mxu0 %v1994_v7  ;;  %v738_v44 = vadd.f32 %v722_v37, %v399_v48  ;;  %v1182_v48 = vld [vmem:[%s2720_s6 + $0x8] sm:$0xff] }
 0x3fa   :  { %v1682_v29 = vpop.f32.mrb[46].mxu1  ;;  %v737_v38 = vadd.f32 %v721_v40, %v398_v50  ;;  %v1879_v50 = vpack.c.bf16 %v1182_v48, %v1181_v47 }
 0x3fb   :  { %v700_v30 = vpop.f32.mrb[47].mxu1  ;;  %v724_v42 = vmax.f32 %v1682_v29, 0.0 }
 0x3fc   :  { %885 = vmatmul.mubr.f32.gmra.mrb[28].mxu0 %v731_v16  ;;  %v723_v45 = vmax.f32 %v700_v30, 0.0  ;;  %1880 = vmatpush3.bf16.msra.mxu1 %v1879_v50  ;;  %v776_v30 = vsub.s32 0, %v775_v51 }
 0x3fd   :  { %890 = vmatprep.mubr.f32.mxu0 %v1994_v7  ;;  %v740_v49 = vadd.f32 %v724_v42, %v401_v53  ;;  %1881 = vmatprep.subr.bf16.mxu1 %v1995_v31  ;;  %v1882_v53 = vpack.c.bf16 %v1184_v52, %v1183_v54 }
 0x3fe   :  { %v739_v43 = vadd.f32 %v723_v45, %v400_v55  ;;  %v1185_v55 = vld [vmem:[%s2720_s6 + $0x20] sm:$0xff]  ;;  %v2584_v32 = vrot.slane %v78_v57, %v776_v30  ;;  %v65_v30 = vld [vmem:[%s2716_s2 + $0x18] sm:$0xff] }
 0x3ff   :  { %v1885_v1 = vpack.c.bf16 %v1186_v36, %v1185_v55 }
 0x400   :  { %891 = vmatmul.mubr.f32.gmra.mrb[30].mxu0 %v732_v22  ;;  %1883 = vmatpush3.bf16.msra.mxu1 %v1882_v53 }
 0x401   :  { %896 = vmatprep.mubr.f32.mxu0 %v1994_v7  ;;  %1884 = vmatprep.subr.bf16.mxu1 %v1995_v31 }
 0x404   :  { %897 = vmatmul.mubr.f32.gmra.mrb[32].mxu0 %v733_v26  ;;  %1886 = vmatpush3.bf16.msra.mxu1 %v1885_v1 }
 0x405   :  { %902 = vmatprep.mubr.f32.mxu0 %v1994_v7  ;;  %1887 = vmatprep.subr.bf16.mxu1 %v1995_v31 }
 0x408   :  { %903 = vmatmul.mubr.f32.gmra.mrb[34].mxu0 %v734_v34  ;;  %1889 = vmatpush3.bf16.msra.mxu1 %v1888_v4 }
 0x409   :  { %908 = vmatprep.mubr.f32.mxu0 %v1994_v7  ;;  %1890 = vmatprep.subr.bf16.mxu1 %v1995_v31 }
 0x40c   :  { %909 = vmatmul.mubr.f32.gmra.mrb[36].mxu0 %v735_v33  ;;  %1892 = vmatpush3.bf16.msra.mxu1 %v1891_v9 }
 0x40d   :  { %914 = vmatprep.mubr.f32.mxu0 %v1994_v7  ;;  %1893 = vmatprep.subr.bf16.mxu1 %v1995_v31 }
 0x410   :  { %915 = vmatmul.mubr.f32.gmra.mrb[38].mxu0 %v736_v39  ;;  %1895 = vmatpush3.bf16.msra.mxu1 %v1894_v11  ;;  %v62_v11 = vld [vmem:[%s2716_s2] sm:$0xff] }
 0x411   :  { %920 = vmatprep.mubr.f32.mxu0 %v1994_v7  ;;  %1896 = vmatprep.subr.bf16.mxu1 %v1995_v31 }
 0x414   :  { %921 = vmatmul.mubr.f32.gmra.mrb[40].mxu0 %v737_v38  ;;  %1898 = vmatpush3.bf16.msra.mxu1 %v1897_v14 }
 0x415   :  { %926 = vmatprep.mubr.f32.mxu0 %v1994_v7  ;;  %1899 = vmatprep.subr.bf16.mxu1 %v1995_v31 }
 0x418   :  { %927 = vmatmul.mubr.f32.gmra.mrb[42].mxu0 %v738_v44 }
 0x419   :  { %932 = vmatprep.mubr.f32.mxu0 %v1994_v7 }
 0x41c   :  { %933 = vmatmul.mubr.f32.gmra.mrb[44].mxu0 %v739_v43 }
 0x41d   :  { %938 = vmatprep.mubr.f32.mxu0 %v1994_v7  ;;  %v1196_v7 = vld [vmem:[%s2720_s6 + $0x78] sm:$0xff] }
 0x41e   :  { %v1900_v41 = vpack.c.bf16 %v1196_v7, %v1195_v15 }
 0x420   :  { %939 = vmatmul.mubr.f32.gmra.mrb[46].mxu0 %v740_v49  ;;  %1901 = vmatpush3.bf16.msra.mxu1 %v1900_v41 }
 0x4b7   :  { %v850_v20 = vpop.f32.mrb[16].mxu0 }
 0x4b8   :  { %v852_v58 = vpop.f32.mrb[17].mxu0  ;;  %v851_v45 = vadd.f32 %v850_v20, %v2584_v32 }
 0x4b9   :  { %v853_v17 = vadd.f32 %v852_v58, %v2575_v19 }
 0x4ba   :  { %v945_v31 = vmax.f32 %v851_v45, 0.0 }
 0x4bb   :  { %v1298_v18 = vmul.f32 -1.442695, %v853_v17  ;;  %v856_v59 = vpop.f32.mrb[18].mxu0 }
 0x4bc   :  { %v858_v60 = vpop.f32.mrb[19].mxu0  ;;  %v857_v54 = vadd.f32 %v856_v59, %v2584_v32 }
 0x4bd   :  { %1906 = vpow2.f32 %v1298_v18  ;;  %v859_v61 = vadd.f32 %v858_v60, %v2575_v19  ;;  %v64_v18 = vld [vmem:[%s2716_s2 + $0x10] sm:$0xff] }
 0x4be   :  { %v946_v6 = vmax.f32 %v857_v54, 0.0 }
 0x4bf   :  { %v1299_v24 = vmul.f32 -1.442695, %v859_v61  ;;  %v862_v25 = vpop.f32.mrb[20].mxu0 }
 0x4c0   :  { %v864_v62 = vpop.f32.mrb[21].mxu0  ;;  %v863_v4 = vadd.f32 %v862_v25, %v2584_v32 }
 0x4c1   :  { %1908 = vpow2.f32 %v1299_v24  ;;  %v865_v21 = vadd.f32 %v864_v62, %v2575_v19 }
 0x4c2   :  { %v947_v41 = vmax.f32 %v863_v4, 0.0 }
 0x4c3   :  { %v1300_v23 = vmul.f32 -1.442695, %v865_v21  ;;  %v868_v63 = vpop.f32.mrb[22].mxu0 }
 0x4c4   :  { %v870_v0 = vpop.f32.mrb[23].mxu0  ;;  %v869_v57 = vadd.f32 %v868_v63, %v2584_v32 }
 0x4c5   :  { %1910 = vpow2.f32 %v1300_v23  ;;  %v871_v16 = vadd.f32 %v870_v0, %v2575_v19 }
 0x4c6   :  { %v948_v0 = vmax.f32 %v869_v57, 0.0 }
 0x4c7   :  { %v1907_v29 = vpop.eup %1906  ;;  %v1301_v22 = vmul.f32 -1.442695, %v871_v16  ;;  %v2581_v27 = vpop.f32.mrb[24].mxu0 }
 0x4c8   :  { %v1009_v28 = vadd.f32 1.0, %v1907_v29  ;;  %v876_v26 = vpop.f32.mrb[25].mxu0  ;;  %v875_v62 = vadd.f32 %v2581_v27, %v2584_v32 }
 0x4c9   :  { %1912 = vpow2.f32 %v1301_v22  ;;  %v877_v34 = vadd.f32 %v876_v26, %v2575_v19 }
 0x4ca   :  { %1914 = vrcp.f32 %v1009_v28 }
 0x4cb   :  { %v1909_v35 = vpop.eup %1908  ;;  %v1302_v33 = vmul.f32 -1.442695, %v877_v34  ;;  %v2586_v39 = vpop.f32.mrb[26].mxu0 }
 0x4cc   :  { %v1010_v40 = vadd.f32 1.0, %v1909_v35  ;;  %v882_v37 = vpop.f32.mrb[27].mxu0 }
 0x4cd   :  { %1916 = vpow2.f32 %v1302_v33  ;;  %v883_v38 = vadd.f32 %v882_v37, %v2575_v19  ;;  %v949_v33 = vmax.f32 %v875_v62, 0.0 }
 0x4ce   :  { %1918 = vrcp.f32 %v1010_v40 }
 0x4cf   :  { %v1911_v44 = vpop.eup %1910  ;;  %v1303_v42 = vmul.f32 -1.442695, %v883_v38  ;;  %v2590_v43 = vpop.f32.mrb[28].mxu0  ;;  %v881_v38 = vadd.f32 %v2586_v39, %v2584_v32 }
 0x4d0   :  { %v1011_v49 = vadd.f32 1.0, %v1911_v44  ;;  %v888_v47 = vpop.f32.mrb[29].mxu0 }
 0x4d1   :  { %1920 = vpow2.f32 %v1303_v42  ;;  %v889_v48 = vadd.f32 %v888_v47, %v2575_v19 }
 0x4d2   :  { %1922 = vrcp.f32 %v1011_v49  ;;  %v66_v49 = vld [vmem:[%s2716_s2 + $0x20] sm:$0xff] }
 0x4d3   :  { %v1913_v50 = vpop.eup %1912  ;;  %v1304_v52 = vmul.f32 -1.442695, %v889_v48  ;;  %v2594_v53 = vpop.f32.mrb[30].mxu0 }
 0x4d4   :  { %v1915_v55 = vpop.eup %1914  ;;  %v1012_v36 = vadd.f32 1.0, %v1913_v50  ;;  %v894_v1 = vpop.f32.mrb[31].mxu0 }
 0x4d5   :  { %v1057_v2 = vmul.f32 %v1915_v55, %v945_v31  ;;  %1924 = vpow2.f32 %v1304_v52  ;;  %v895_v3 = vadd.f32 %v894_v1, %v2575_v19  ;;  %v887_v52 = vadd.f32 %v2590_v43, %v2584_v32 }
 0x4d6   :  { %1926 = vrcp.f32 %v1012_v36  ;;  %v950_v1 = vmax.f32 %v881_v38, 0.0 }
 0x4d7   :  { %v1917_v5 = vpop.eup %1916  ;;  %v1305_v8 = vmul.f32 -1.442695, %v895_v3  ;;  %v2598_v9 = vpop.f32.mrb[32].mxu0  ;;  %v1073_v51 = vmul.f32 %v1057_v2, %v62_v11 }
 0x4d8   :  { %v1919_v10 = vpop.eup %1918  ;;  %v1013_v13 = vadd.f32 1.0, %v1917_v5  ;;  %v900_v14 = vpop.f32.mrb[33].mxu0  ;;  %v67_v5 = vld [vmem:[%s2716_s2 + $0x28] sm:$0xff] }
 0x4d9   :  { %v1058_v15 = vmul.f32 %v1919_v10, %v946_v6  ;;  %1928 = vpow2.f32 %v1305_v8  ;;  %v901_v7 = vadd.f32 %v900_v14, %v2575_v19 }
 0x4da   :  { %1930 = vrcp.f32 %v1013_v13  ;;  %v951_v13 = vmax.f32 %v887_v52, 0.0 }
 0x4db   :  { %v1921_v46 = vpop.eup %1920  ;;  %v1074_v56 = vmul.f32 %v1058_v15, %v63_v12  ;;  %v1306_v20 = vmul.f32 -1.442695, %v901_v7  ;;  %v2608_v58 = vpop.f32.mrb[34].mxu0  ;;  %v893_v15 = vadd.f32 %v2594_v53, %v2584_v32 }
 0x4dc   :  { %v1923_v17 = vpop.eup %1922  ;;  %v1014_v59 = vadd.f32 1.0, %v1921_v46  ;;  %v906_v60 = vpop.f32.mrb[35].mxu0 }
 0x4dd   :  { %v1138_v61 = vadd.f32 %v1074_v56, %v1073_v51  ;;  %v1171_v24 = vmax.f32 %v1073_v51, %v1074_v56  ;;  %v1059_v25 = vmul.f32 %v1923_v17, %v947_v41  ;;  %1932 = vpow2.f32 %v1306_v20  ;;  %v68_v51 = vld [vmem:[%s2716_s2 + $0x30] sm:$0xff] }
 0x4de   :  { %1934 = vrcp.f32 %v1014_v59  ;;  %v907_v21 = vadd.f32 %v906_v60, %v2575_v19  ;;  %v952_v53 = vmax.f32 %v893_v15, 0.0 }
 0x4df   :  { %v1925_v23 = vpop.eup %1924  ;;  %v1075_v63 = vmul.f32 %v1059_v25, %v64_v18  ;;  %v2616_v16 = vpop.f32.mrb[36].mxu0 }
 0x4e0   :  { %v1927_v29 = vpop.eup %1926  ;;  %v1015_v22 = vadd.f32 1.0, %v1925_v23  ;;  %v1307_v28 = vmul.f32 -1.442695, %v907_v21  ;;  %v912_v26 = vpop.f32.mrb[37].mxu0  ;;  %v69_v23 = vld [vmem:[%s2716_s2 + $0x38] sm:$0xff] }
 0x4e1   :  { %v1139_v34 = vadd.f32 %v1138_v61, %v1075_v63  ;;  %v1060_v35 = vmul.f32 %v1927_v29, %v948_v0  ;;  %v913_v27 = vadd.f32 %v912_v26, %v2575_v19 }
 0x4e2   :  { %1936 = vrcp.f32 %v1015_v22 }
 0x4e3   :  { %v1929_v40 = vpop.eup %1928  ;;  %v1076_v37 = vmul.f32 %v1060_v35, %v65_v30  ;;  %1938 = vpow2.f32 %v1307_v28  ;;  %v1308_v44 = vmul.f32 -1.442695, %v913_v27  ;;  %v2624_v45 = vpop.f32.mrb[38].mxu0  ;;  %v70_v27 = vld [vmem:[%s2716_s2 + $0x40] sm:$0xff] }
 0x4e4   :  { %v1931_v42 = vpop.eup %1930  ;;  %v1016_v47 = vadd.f32 1.0, %v1929_v40  ;;  %v918_v48 = vpop.f32.mrb[39].mxu0 }
 0x4e5   :  { %v1140_v50 = vadd.f32 %v1139_v34, %v1076_v37  ;;  %v1172_v31 = vmax.f32 %v1075_v63, %v1076_v37  ;;  %v1061_v54 = vmul.f32 %v1931_v42, %v949_v33  ;;  %1940 = vpow2.f32 %v1308_v44 }
 0x4e6   :  { %1942 = vrcp.f32 %v1016_v47  ;;  %v919_v39 = vadd.f32 %v918_v48, %v2575_v19  ;;  %v905_v33 = vadd.f32 %v2608_v58, %v2584_v32 }
 0x4e7   :  { %v1933_v55 = vpop.eup %1932  ;;  %v1077_v36 = vmul.f32 %v1061_v54, %v66_v49  ;;  %v2632_v2 = vpop.f32.mrb[40].mxu0  ;;  %v2634_v3 = vmax.f32 %v1171_v24, %v1172_v31  ;;  %v899_v24 = vadd.f32 %v2598_v9, %v2584_v32 }
 0x4e8   :  { %v1935_v4 = vpop.eup %1934  ;;  %v1017_v6 = vadd.f32 1.0, %v1933_v55  ;;  %v1309_v8 = vmul.f32 -1.442695, %v919_v39  ;;  %v924_v10 = vpop.f32.mrb[41].mxu0  ;;  %v954_v39 = vmax.f32 %v905_v33, 0.0  ;;  %v71_v55 = vld [vmem:[%s2716_s2 + $0x48] sm:$0xff] }
 0x4e9   :  { %v1141_v11 = vadd.f32 %v1140_v50, %v1077_v36  ;;  %v1062_v43 = vmul.f32 %v1935_v4, %v950_v1  ;;  %v925_v12 = vadd.f32 %v924_v10, %v2575_v19  ;;  %v953_v26 = vmax.f32 %v899_v24, 0.0 }
 0x4ea   :  { %1944 = vrcp.f32 %v1017_v6  ;;  %v911_v50 = vadd.f32 %v2616_v16, %v2584_v32  ;;  %v72_v16 = vld [vmem:[%s2716_s2 + $0x50] sm:$0xff]  ;;  %v917_v10 = vadd.f32 %v2624_v45, %v2584_v32 }
 0x4eb   :  { %v1078_v14 = vmul.f32 %v1062_v43, %v67_v5  ;;  %1946 = vpow2.f32 %v1309_v8  ;;  %v1310_v7 = vmul.f32 -1.442695, %v925_v12  ;;  %v2642_v41 = vpop.f32.mrb[42].mxu0 }
 0x4ec   :  { %v1937_v46 = vpop.eup %1936  ;;  %v930_v56 = vpop.f32.mrb[43].mxu0  ;;  %v955_v1 = vmax.f32 %v911_v50, 0.0  ;;  %v929_v45 = vadd.f32 %v2642_v41, %v2584_v32  ;;  %v75_v41 = vld [vmem:[%s2716_s2 + $0x68] sm:$0xff] }
 0x4ed   :  { %v1939_v57 = vpop.eup %1938  ;;  %v1142_v20 = vadd.f32 %v1141_v11, %v1078_v14  ;;  %v1063_v17 = vmul.f32 %v1937_v46, %v951_v13  ;;  %1948 = vpow2.f32 %v1310_v7  ;;  %v931_v18 = vadd.f32 %v930_v56, %v2575_v19 }
 0x4ee   :  { %v1018_v59 = vadd.f32 1.0, %v1939_v57  ;;  %v923_v13 = vadd.f32 %v2632_v2, %v2584_v32  ;;  %v956_v7 = vmax.f32 %v917_v10, 0.0  ;;  %v74_v2 = vld [vmem:[%s2716_s2 + $0x60] sm:$0xff]  ;;  %v958_v24 = vmax.f32 %v929_v45, 0.0 }
 0x4ef   :  { %v1941_v60 = vpop.eup %1940  ;;  %v1079_v61 = vmul.f32 %v1063_v17, %v68_v51  ;;  %v1311_v25 = vmul.f32 -1.442695, %v931_v18  ;;  %v2650_v62 = vpop.f32.mrb[44].mxu0  ;;  %v73_v51 = vld [vmem:[%s2716_s2 + $0x58] sm:$0xff] }
 0x4f0   :  { %v1943_v21 = vpop.eup %1942  ;;  %1950 = vrcp.f32 %v1018_v59  ;;  %v1019_v63 = vadd.f32 1.0, %v1941_v60  ;;  %v936_v0 = vpop.f32.mrb[45].mxu0 }
 0x4f1   :  { %v1143_v29 = vadd.f32 %v1142_v20, %v1079_v61  ;;  %v1064_v30 = vmul.f32 %v1943_v21, %v952_v53  ;;  %1952 = vpow2.f32 %v1311_v25  ;;  %v937_v22 = vadd.f32 %v936_v0, %v2575_v19 }
 0x4f2   :  { %1954 = vrcp.f32 %v1019_v63  ;;  %v957_v20 = vmax.f32 %v923_v13, 0.0  ;;  %v935_v25 = vadd.f32 %v2650_v62, %v2584_v32  ;;  %v1174_v62 = vrot.slane %v2634_v3, 4 }
 0x4f3   :  { %v1080_v28 = vmul.f32 %v1064_v30, %v69_v23  ;;  %v1312_v9 = vmul.f32 -1.442695, %v937_v22  ;;  %v2656_v34 = vpop.f32.mrb[46].mxu0 }
 0x4f4   :  { %v1945_v35 = vpop.eup %1944  ;;  %v942_v40 = vpop.f32.mrb[47].mxu0  ;;  %v941_v30 = vadd.f32 %v2656_v34, %v2584_v32  ;;  %v1175_v32 = vmax.f32 %v2634_v3, %v1174_v62 }
 0x4f5   :  { %v1947_v37 = vpop.eup %1946  ;;  %v1144_v38 = vadd.f32 %v1143_v29, %v1080_v28  ;;  %v1065_v44 = vmul.f32 %v1945_v35, %v953_v26  ;;  %1956 = vpow2.f32 %v1312_v9  ;;  %v943_v42 = vadd.f32 %v942_v40, %v2575_v19  ;;  %v76_v28 = vld [vmem:[%s2716_s2 + $0x70] sm:$0xff]  ;;  %v77_v40 = vld [vmem:[%s2716_s2 + $0x78] sm:$0xff] }
 0x4f6   :  { %v1020_v49 = vadd.f32 1.0, %v1947_v37  ;;  %v959_v29 = vmax.f32 %v935_v25, 0.0 }
 0x4f7   :  { %v1949_v47 = vpop.eup %1948  ;;  %v1081_v48 = vmul.f32 %v1065_v44, %v70_v27  ;;  %v1313_v31 = vmul.f32 -1.442695, %v943_v42  ;;  %v960_v27 = vmax.f32 %v941_v30, 0.0  ;;  %v1176_v42 = vrot.slane %v1175_v32, 2 }
 0x4f8   :  { %1958 = vrcp.f32 %v1020_v49  ;;  %v1021_v54 = vadd.f32 1.0, %v1949_v47 }
 0x4f9   :  { %v1145_v52 = vadd.f32 %v1144_v38, %v1081_v48  ;;  %1960 = vpow2.f32 %v1313_v31  ;;  %v1177_v48 = vmax.f32 %v1175_v32, %v1176_v42 }
 0x4fa   :  { %v1951_v58 = vpop.eup %1950  ;;  %1962 = vrcp.f32 %v1021_v54 }
 0x4fb   :  { %v1953_v36 = vpop.eup %1952  ;;  %v1066_v19 = vmul.f32 %v1951_v58, %v954_v39  ;;  %v1178_v54 = vrot.slane %v1177_v48, 1 }
 0x4fc   :  { %v1955_v4 = vpop.eup %1954  ;;  %v1022_v5 = vadd.f32 1.0, %v1953_v36  ;;  %v79_v36 = vld [vmem:[%s2721_s7] sm:$0x1] }
 0x4fd   :  { %v1082_v6 = vmul.f32 %v1066_v19, %v71_v55  ;;  %v1067_v8 = vmul.f32 %v1955_v4, %v955_v1  ;;  %v1179_v58 = vmax.f32 %v1177_v48, %v1178_v54 }
 0x4fe   :  { %1964 = vrcp.f32 %v1022_v5 }
 0x4ff   :  { %v1957_v11 = vpop.eup %1956  ;;  %v1146_v43 = vadd.f32 %v1145_v52, %v1082_v6  ;;  %v1083_v12 = vmul.f32 %v1067_v8, %v72_v16 }
 0x500   :  { %v1023_v14 = vadd.f32 1.0, %v1957_v11 }
 0x501   :  { %v1147_v15 = vadd.f32 %v1146_v43, %v1083_v12 }
 0x502   :  { %v1959_v46 = vpop.eup %1958  ;;  %1966 = vrcp.f32 %v1023_v14 }
 0x503   :  { %v1961_v56 = vpop.eup %1960  ;;  %v1068_v57 = vmul.f32 %v1959_v46, %v956_v7 }
 0x504   :  { %v1963_v17 = vpop.eup %1962  ;;  %v1024_v18 = vadd.f32 1.0, %v1961_v56 }
 0x505   :  { %v1084_v59 = vmul.f32 %v1068_v57, %v73_v51  ;;  %v1069_v60 = vmul.f32 %v1963_v17, %v957_v20 }
 0x506   :  { %1968 = vrcp.f32 %v1024_v18 }
 0x507   :  { %v1148_v61 = vadd.f32 %v1147_v15, %v1084_v59  ;;  %v1085_v53 = vmul.f32 %v1069_v60, %v74_v2 }
 0x508   :  { %v1965_v21 = vpop.eup %1964 }
 0x509   :  { %v1149_v23 = vadd.f32 %v1148_v61, %v1085_v53  ;;  %v1070_v63 = vmul.f32 %v1965_v21, %v958_v24 }
 0x50b   :  { %v1086_v0 = vmul.f32 %v1070_v63, %v75_v41 }
 0x50c   :  { %v1967_v22 = vpop.eup %1966 }
 0x50d   :  { %v1150_v26 = vadd.f32 %v1149_v23, %v1086_v0  ;;  %v1071_v9 = vmul.f32 %v1967_v22, %v959_v29 }
 0x50f   :  { %v1087_v35 = vmul.f32 %v1071_v9, %v76_v28 }
 0x510   :  { %v1969_v33 = vpop.eup %1968 }
 0x511   :  { %v1151_v37 = vadd.f32 %v1150_v26, %v1087_v35  ;;  %v1072_v38 = vmul.f32 %v1969_v33, %v960_v27 }
 0x513   :  { %v1088_v34 = vmul.f32 %v1072_v38, %v77_v40 }
 0x515   :  { %v1152_v44 = vadd.f32 %v1151_v37, %v1088_v34 }
 0x517   :  { %v1153_v49 = vrot.slane %v1152_v44, 4 }
 0x519   :  { %v1154_v47 = vadd.f32 %v1153_v49, %v1152_v44 }
 0x51b   :  { %v1155_v50 = vrot.slane %v1154_v47, 2 }
 0x51d   :  { %v1156_v31 = vadd.f32 %v1155_v50, %v1154_v47 }
 0x51f   :  { %v1157_v52 = vrot.slane %v1156_v31, 1 }
 0x521   :  { %v1158_v39 = vadd.f32 %v1157_v52, %v1156_v31 }
 0x523   :  { %v1180_v55 = vmul.f32 %v1179_v58, %v1158_v39 }
 0x525   :  { %1716 = vmatmul.mubr.f32.vlgmr.msra.gmra.mrb[48].mxu1 %v1180_v55 }
 0x5f8   :  { %v1263_v3 = vpop.f32.mrb[48].mxu1 }
 0x5f9   :  { %v1264_v19 = vadd.f32 %v1263_v3, %v79_v36  ;;  %v1717_v1 = vpop.f32.mrb[49].mxu1 }
 0x5fb   :  { %1267 = vst [vmem:[#allocation2] sm:$0x1] %v1264_v19 }
 0x5fc   :  { %1981 = shalt.err (!%p1978_p4)
}
 0x5fd   :  { %s1982_s22 = scalar_lea.hbm %s2722_s8, 16 }
 0x5fe   :  { %p1983_p5 = scmp.ne.s32.totalorder %s2722_s8, %s1982_s22  ;;  %p1986_p6 = scmp.lt.u32.totalorder %s1982_s22, %s2722_s8 }
 0x600   :  { %p1988_p7 = pnand %p1986_p6, %p1983_p5 }
 0x602   :  { %1991 = shalt.err (!%p1988_p7)
}
 0x603   :  { %1277 = dma.vmem_to_hbm [thread:$0]  %s1275_s17, 16, %s2722_s8, [#allocation3]  }
 0x604   :  { %1992 = dma.done.wait [#allocation3], 16  }
 0x605   :  { %1993 = vsyncadd [#allocation3], 4294967280 }
 0x606   :  { %1281 = vsyncpa [#allocation3], 1 }

</bundles_post_ra>
